<compile_context>
chip_gen: v7x
topology: tpu7x:2x2x1
jax: 0.10.0
libtpu: 0.0.40
codegen_flags: <defaults>
</compile_context>

<pallas_src>
import functools

import jax
import jax.numpy as jnp
from jax import lax
from jax.experimental import pallas as pl
from jax.experimental.pallas import tpu as pltpu


_NEG_INF = float(-jnp.finfo(jnp.float32).max)
# Scoped-VMEM ceiling requested for every kernel.  Actual worst-case usage with
# the tile caps below is ~20 MiB, so 48 MiB is safe on v5e/v6e (128 MiB
# physical) and v7x (64 MiB physical) while overriding v5e's 16 MiB default.
_VMEM_LIMIT_BYTES = 48 * 1024 * 1024


def _sublane_multiple(dtype):
    # bf16 packs (16, 128) per vreg; f32 packs (8, 128).
    return 16 if dtype == jnp.bfloat16 else 8


def _largest_tile(size, maximum, multiple):
    """Largest t <= maximum with t % multiple == 0 and size % t == 0, else the
    full dim (always a legal BlockSpec block size).
    TODO(synk): the full-dim fallback can blow up VMEM for huge non-divisible
    dims; pad to tile multiples upstream if that ever happens."""
    t = min(maximum, size)
    t = (t // multiple) * multiple
    while t >= multiple:
        if size % t == 0:
            return t
        t -= multiple
    return size


# ----------------------------------------------------------------------------
# Tiled, pipelined matmuls (projections)
# ----------------------------------------------------------------------------
def _matmul_fullk_kernel(x_ref, w_ref, o_ref):
    # Whole K resident: single MXU pass, no accumulator scratch.
    o_ref[...] = jnp.dot(x_ref[...], w_ref[...],
                         preferred_element_type=jnp.float32).astype(o_ref.dtype)


def _matmul_ksplit_kernel(x_ref, w_ref, o_ref, acc_ref):
    @pl.when(pl.program_id(2) == 0)
    def _init():
        acc_ref[...] = jnp.zeros_like(acc_ref)

    acc_ref[...] += jnp.dot(x_ref[...], w_ref[...],
                            preferred_element_type=jnp.float32)

    @pl.when(pl.program_id(2) == pl.num_programs(2) - 1)
    def _finalize():
        o_ref[...] = acc_ref[...].astype(o_ref.dtype)


def linear(x2d, w_t, *, tm_max=512, tn_max=512, tk_max=512, full_k_max=2048):
    """x2d: (M, K), w_t: (K, N)  ->  (M, N) via a tiled Pallas matmul.

    For K <= full_k_max the whole reduction is kept resident (no K grid axis),
    output is written directly; otherwise a K-split grid with an f32 VMEM
    accumulator is used."""
    M, K = x2d.shape
    K2, N = w_t.shape
    assert K == K2
    sub = _sublane_multiple(x2d.dtype)
    tm = _largest_tile(M, tm_max, sub)
    tn = _largest_tile(N, tn_max, 128)

    if K <= full_k_max:
        grid = (M // tm, N // tn)
        return pl.pallas_call(
            _matmul_fullk_kernel,
            out_shape=jax.ShapeDtypeStruct((M, N), x2d.dtype),
            grid_spec=pltpu.PrefetchScalarGridSpec(
                num_scalar_prefetch=0,
                grid=grid,
                in_specs=[
                    pl.BlockSpec((tm, K), lambda i, j: (i, 0)),
                    pl.BlockSpec((K, tn), lambda i, j: (0, j)),
                ],
                out_specs=pl.BlockSpec((tm, tn), lambda i, j: (i, j)),
            ),
            compiler_params=pltpu.CompilerParams(
                dimension_semantics=("parallel", "parallel"),
                vmem_limit_bytes=_VMEM_LIMIT_BYTES,
            ),
        )(x2d, w_t)

    tk = _largest_tile(K, tk_max, 128)
    grid = (M // tm, N // tn, K // tk)
    return pl.pallas_call(
        _matmul_ksplit_kernel,
        out_shape=jax.ShapeDtypeStruct((M, N), x2d.dtype),
        grid_spec=pltpu.PrefetchScalarGridSpec(
            num_scalar_prefetch=0,
            grid=grid,
            in_specs=[
                pl.BlockSpec((tm, tk), lambda i, j, k: (i, k)),
                pl.BlockSpec((tk, tn), lambda i, j, k: (k, j)),
            ],
            out_specs=pl.BlockSpec((tm, tn), lambda i, j, k: (i, j)),
            scratch_shapes=[pltpu.VMEM((tm, tn), jnp.float32)],
        ),
        compiler_params=pltpu.CompilerParams(
            dimension_semantics=("parallel", "parallel", "arbitrary"),
            vmem_limit_bytes=_VMEM_LIMIT_BYTES,
        ),
    )(x2d, w_t)


# ----------------------------------------------------------------------------
# Flash-attention kernel (fused rotary, online softmax, causal tile handling)
# ----------------------------------------------------------------------------
def _rotate(x_f32, c1, c2, s1, s2, rot, dh):
    """Reference rotary math in f32: t*cos + rotate_half(t)*sin over [:rot]."""
    half = rot // 2
    x1 = x_f32[:, :half]
    x2 = x_f32[:, half:rot]
    o1 = x1 * c1 - x2 * s1
    o2 = x2 * c2 + x1 * s2
    parts = [o1, o2]
    if rot < dh:
        parts.append(x_f32[:, rot:])
    return jnp.concatenate(parts, axis=-1)


def _flash_attn_kernel(*refs, causal, scale, heads, dh, rot, tq, tk,
                       has_rotary, approx_recip):
    if has_rotary:
        (q_ref, k_ref, v_ref, cq_ref, sq_ref, ck_ref, sk_ref,
         o_ref, q_sc, m_sc, l_sc, acc_sc) = refs
    else:
        (q_ref, k_ref, v_ref, o_ref, q_sc, m_sc, l_sc, acc_sc) = refs

    qi = pl.program_id(1)
    ki = pl.program_id(2)
    nk = pl.num_programs(2)
    half = rot // 2 if has_rotary else 0

    @pl.when(ki == 0)
    def _init():
        m_sc[...] = jnp.full_like(m_sc, -jnp.inf)
        l_sc[...] = jnp.zeros_like(l_sc)
        acc_sc[...] = jnp.zeros_like(acc_sc)
        # Stage the q tile once per q block: rotary (f32, matching the PyTorch
        # autocast-disabled path) + softmax scale folded in, then stored in the
        # operand dtype.  Reused for every kv step.
        if has_rotary:
            cq = cq_ref[...]
            sq = sq_ref[...]
            c1, c2 = cq[:, :half], cq[:, half:]
            s1, s2 = sq[:, :half], sq[:, half:]
            for hh in range(heads):
                lo = hh * dh
                qh = q_ref[0, :, lo:lo + dh].astype(jnp.float32)
                qr = _rotate(qh, c1, c2, s1, s2, rot, dh) * scale
                q_sc[:, lo:lo + dh] = qr.astype(q_sc.dtype)
        else:
            q_sc[...] = (q_ref[0].astype(jnp.float32) * scale).astype(q_sc.dtype)

    def _compute(apply_mask):
        if apply_mask:
            row = qi * tq + lax.broadcasted_iota(jnp.int32, (tq, tk), 0)
            col = ki * tk + lax.broadcasted_iota(jnp.int32, (tq, tk), 1)
            masked = col > row
        if has_rotary:
            ck = ck_ref[...]
            sk = sk_ref[...]
            kc1, kc2 = ck[:, :half], ck[:, half:]
            ks1, ks2 = sk[:, :half], sk[:, half:]
        for hh in range(heads):  # static unroll; heads live in the lane axis
            lo, hi = hh * dh, (hh + 1) * dh
            qh = q_sc[:, lo:hi]                   # (tq, dh), scaled (+rotated)
            if has_rotary:
                kh = _rotate(k_ref[0, :, lo:hi].astype(jnp.float32),
                             kc1, kc2, ks1, ks2, rot, dh).astype(k_ref.dtype)
            else:
                kh = k_ref[0, :, lo:hi]           # (tk, dh)
            vh = v_ref[0, :, lo:hi]               # (tk, dh)
            # q @ k^T without materializing a transposed K.
            s = lax.dot_general(qh, kh, (((1,), (1,)), ((), ())),
                                preferred_element_type=jnp.float32)  # (tq, tk)
            if apply_mask:
                s = jnp.where(masked, _NEG_INF, s)
            m_prev = m_sc[:, hh:hh + 1]                               # (tq, 1)
            m_new = jnp.maximum(m_prev, s.max(axis=-1, keepdims=True))
            alpha = jnp.exp(m_prev - m_new)
            p = jnp.exp(s - m_new)
            l_sc[:, hh:hh + 1] = alpha * l_sc[:, hh:hh + 1] + p.sum(
                axis=-1, keepdims=True)
            acc_sc[:, lo:hi] = alpha * acc_sc[:, lo:hi] + lax.dot_general(
                p.astype(vh.dtype), vh, (((1,), (0,)), ((), ())),
                preferred_element_type=jnp.float32)
            m_sc[:, hh:hh + 1] = m_new

    if causal:
        # in_range: tile is not entirely above the diagonal (else skip it; its
        # K/V DMAs are already elided by the clamped kv index_map).
        in_range = ki * tk <= (qi + 1) * tq - 1
        # on_diag: tile straddles the diagonal -> needs the mask; interior
        # lower-triangle tiles skip the iota/compare/select entirely.
        on_diag = ki * tk + tk - 1 > qi * tq

        @pl.when(jnp.logical_and(in_range, on_diag))
        def _masked():
            _compute(True)

        @pl.when(jnp.logical_and(in_range, jnp.logical_not(on_diag)))
        def _unmasked():
            _compute(False)

        last_ki = jnp.minimum(nk - 1, ((qi + 1) * tq - 1) // tk)
    else:
        _compute(False)
        last_ki = nk - 1

    @pl.when(ki == last_ki)
    def _finalize():
        # One EUP reciprocal for all heads, then a single lane-dense store.
        inv = pl.reciprocal(l_sc[...], approx=approx_recip)   # (tq, heads)
        parts = [acc_sc[:, hh * dh:(hh + 1) * dh] * inv[:, hh:hh + 1]
                 for hh in range(heads)]
        o_ref[0] = jnp.concatenate(parts, axis=-1).astype(o_ref.dtype)


def attention_core(qkv, *, causal, num_heads, dim_heads, cos=None, sin=None,
                   approx_recip=False, tq_max=256, tk_max=256):
    """qkv: packed (B, N, 3*D) projection output; returns (B, N, D).

    Heads stay in the lane axis (`b n (h d)` layout) end to end; rotary (if
    cos/sin given, shape (N, rot_dim), f32) is applied inside the kernel."""
    B, N, threeD = qkv.shape
    D = threeD // 3
    assert threeD == 3 * D and D == num_heads * dim_heads
    sub = _sublane_multiple(qkv.dtype)
    tq = _largest_tile(N, tq_max, sub)
    tk = _largest_tile(N, tk_max, sub)
    grid = (B, N // tq, N // tk)
    scale = 1.0 / float(dim_heads) ** 0.5

    has_rotary = cos is not None
    rot = cos.shape[-1] if has_rotary else 0
    if has_rotary:
        assert rot % 2 == 0 and rot <= dim_heads and cos.shape[0] == N

    # A last-dim block of size D on the packed (B, N, 3D) array is only legal
    # when D is a multiple of 128; otherwise fall back to an explicit split.
    packed = (D % 128 == 0)
    if packed:
        q_arr = k_arr = v_arr = qkv
        qc, kc, vc = 0, 1, 2
    else:
        q_arr, k_arr, v_arr = jnp.split(qkv, 3, axis=-1)
        qc = kc = vc = 0

    if causal:
        def kv_block(qi, ki):
            # Clamp the kv block index for fully-masked tiles so the pipeline
            # re-uses the resident block instead of issuing a new DMA.
            return jnp.minimum(ki, ((qi + 1) * tq - 1) // tk)
    else:
        def kv_block(qi, ki):
            return ki

    def q_map(b, qi, ki):
        return (b, qi, qc)

    def k_map(b, qi, ki):
        return (b, kv_block(qi, ki), kc)

    def v_map(b, qi, ki):
        return (b, kv_block(qi, ki), vc)

    in_specs = [
        pl.BlockSpec((1, tq, D), q_map),
        pl.BlockSpec((1, tk, D), k_map),
        pl.BlockSpec((1, tk, D), v_map),
    ]
    args = [q_arr, k_arr, v_arr]
    if has_rotary:
        in_specs += [
            pl.BlockSpec((tq, rot), lambda b, qi, ki: (qi, 0)),
            pl.BlockSpec((tq, rot), lambda b, qi, ki: (qi, 0)),
            pl.BlockSpec((tk, rot), lambda b, qi, ki: (kv_block(qi, ki), 0)),
            pl.BlockSpec((tk, rot), lambda b, qi, ki: (kv_block(qi, ki), 0)),
        ]
        args += [cos, sin, cos, sin]

    kernel = functools.partial(
        _flash_attn_kernel, causal=causal, scale=scale, heads=num_heads,
        dh=dim_heads, rot=rot, tq=tq, tk=tk, has_rotary=has_rotary,
        approx_recip=approx_recip)

    return pl.pallas_call(
        kernel,
        out_shape=jax.ShapeDtypeStruct((B, N, D), qkv.dtype),
        grid_spec=pltpu.PrefetchScalarGridSpec(
            num_scalar_prefetch=0,
            grid=grid,
            in_specs=in_specs,
            out_specs=pl.BlockSpec((1, tq, D), lambda b, qi, ki: (b, qi, 0)),
            scratch_shapes=[
                pltpu.VMEM((tq, D), qkv.dtype),             # staged q tile
                pltpu.VMEM((tq, num_heads), jnp.float32),   # running max
                pltpu.VMEM((tq, num_heads), jnp.float32),   # running sum
                pltpu.VMEM((tq, D), jnp.float32),           # output accumulator
            ],
        ),
        compiler_params=pltpu.CompilerParams(
            dimension_semantics=("parallel", "parallel", "arbitrary"),
            vmem_limit_bytes=_VMEM_LIMIT_BYTES,
        ),
    )(*args)


# ----------------------------------------------------------------------------
# Attention module (self-attention path: dim_context=None, natten=None)
# ----------------------------------------------------------------------------
class AttentionPallas:
    def __init__(self, dim, dim_heads=64, causal=False, key=None,
                 compute_dtype=None):
        assert dim % dim_heads == 0
        self.dim = dim
        self.dim_heads = dim_heads
        self.num_heads = dim // dim_heads
        self.causal = causal
        # compute_dtype=jnp.bfloat16 -> bf16 operands end to end with f32
        # accumulation (production config); None -> pure f32.
        self.compute_dtype = compute_dtype
        k1, k2 = jax.random.split(key)
        # f32 masters in nn.Linear layout (out_features, in_features), kept for
        # the pure-JAX reference.
        self.w_qkv = jax.random.normal(k1, (dim * 3, dim), jnp.float32) * 0.02
        # NOTE: module default zero_init_output=True would zero this weight; a
        # deterministic random init keeps the full path exercised.
        self.w_out = jax.random.normal(k2, (dim, dim), jnp.float32) * 0.02
        pdt = compute_dtype if compute_dtype is not None else jnp.float32
        # Pre-transposed (and pre-cast) copies consumed by the kernels.
        self.w_qkv_t = jnp.transpose(self.w_qkv).astype(pdt)   # (dim, 3*dim)
        self.w_out_t = jnp.transpose(self.w_out).astype(pdt)   # (dim, dim)

    def __call__(self, x, mask=None, rotary_pos_emb=None, causal=None):
        # TODO(synk): optional key-padding mask (final_attn_mask) path is not
        # wired into the attention kernel; only mask=None is supported here.
        assert mask is None
        B, N, D = x.shape
        h, dh = self.num_heads, self.dim_heads
        causal = self.causal if causal is None else causal
        if N == 1 and causal:
            causal = False

        in_dtype = x.dtype
        xk = x.astype(self.compute_dtype) if self.compute_dtype is not None else x

        # --- qkv projection (tiled Pallas matmul), kept packed (no split) ---
        qkv = linear(xk.reshape(B * N, D), self.w_qkv_t).reshape(B, N, 3 * D)

        # --- rotary cos/sin tables (tiny, f32); rotation itself is fused ---
        cos = sin = None
        if rotary_pos_emb is not None:
            freqs, _ = rotary_pos_emb
            f = freqs.astype(jnp.float32)[-N:]
            cos, sin = jnp.cos(f), jnp.sin(f)

        # --- flash attention (fused rotary), output already `b n (h d)` ---
        out = attention_core(
            qkv, causal=causal, num_heads=h, dim_heads=dh, cos=cos, sin=sin,
            approx_recip=(self.compute_dtype == jnp.bfloat16))

        # --- output projection (tiled Pallas matmul) ---
        out = linear(out.reshape(B * N, D), self.w_out_t).reshape(B, N, D)
        return out.astype(in_dtype)


# ----------------------------------------------------------------------------
# Pure-JAX reference (mirrors the PyTorch math path) for validation
# ----------------------------------------------------------------------------
def rotate_half(x):
    d = x.shape[-1] // 2
    x1, x2 = x[..., :d], x[..., d:]
    return jnp.concatenate((-x2, x1), axis=-1)


def apply_rotary_pos_emb(t, freqs, scale=1.0):
    out_dtype = t.dtype
    rot_dim, seq_len = freqs.shape[-1], t.shape[-2]
    freqs = freqs[-seq_len:, :]
    t_rot, t_unrot = t[..., :rot_dim], t[..., rot_dim:]
    t_rot = t_rot * jnp.cos(freqs) * scale + rotate_half(t_rot) * jnp.sin(freqs) * scale
    return jnp.concatenate((t_rot.astype(out_dtype), t_unrot.astype(out_dtype)), axis=-1)


def reference_forward(module, x, rotary_pos_emb=None, causal=None):
    B, N, D = x.shape
    h, dh = module.num_heads, module.dim_heads
    causal = module.causal if causal is None else causal
    if N == 1 and causal:
        causal = False
    qkv = x.reshape(B * N, D) @ module.w_qkv.T
    qkv = qkv.reshape(B, N, 3 * D)
    q, k, v = jnp.split(qkv, 3, axis=-1)
    q, k, v = [t.reshape(B, N, h, dh).transpose(0, 2, 1, 3) for t in (q, k, v)]
    if rotary_pos_emb is not None:
        freqs, _ = rotary_pos_emb
        q = apply_rotary_pos_emb(q.astype(jnp.float32), freqs.astype(jnp.float32))
        k = apply_rotary_pos_emb(k.astype(jnp.float32), freqs.astype(jnp.float32))
    scale = 1.0 / dh ** 0.5
    dots = jnp.einsum("bhid,bhjd->bhij", q, k) * scale
    if causal:
        cm = jnp.triu(jnp.ones((N, N), bool), k=1)
        dots = jnp.where(cm, -jnp.finfo(jnp.float32).max, dots)
    attn = jax.nn.softmax(dots.astype(jnp.float32), axis=-1).astype(dots.dtype)
    out = jnp.einsum("bhij,bhjd->bhid", attn, v)
    out = out.transpose(0, 2, 1, 3).reshape(B, N, D)
    return (out.reshape(B * N, D) @ module.w_out.T).reshape(B, N, D)


if __name__ == "__main__":
    key = jax.random.PRNGKey(0)
    k_x, k_params = jax.random.split(key)

    B, N, dim, dim_heads = 2, 16, 128, 32  # heads = 4
    x = jax.random.normal(k_x, (B, N, dim), jnp.float32)

    # rotary freqs: (seq, dim_heads), standard rotary construction
    half = dim_heads // 2
    inv_freq = 1.0 / (10000.0 ** (jnp.arange(0, half, dtype=jnp.float32) / half))
    angles = jnp.arange(N, dtype=jnp.float32)[:, None] * inv_freq[None, :]
    freqs = jnp.concatenate([angles, angles], axis=-1)  # (N, dim_heads)
    rotary = (freqs, 1.0)

    # --- f32 path: strict check vs the pure-JAX reference (causal + rotary) ---
    mod_f32 = AttentionPallas(dim, dim_heads=dim_heads, causal=True, key=k_params)
    out = jax.block_until_ready(mod_f32(x, rotary_pos_emb=rotary))
    ref = reference_forward(mod_f32, x, rotary_pos_emb=rotary)
    assert out.shape == (B, N, dim)
    assert jnp.allclose(out, ref, rtol=1e-4, atol=1e-4), "f32 causal+rotary mismatch"

    # --- f32 path: non-causal / no-rotary branch ---
    out_nc = jax.block_until_ready(mod_f32(x, causal=False))
    ref_nc = reference_forward(mod_f32, x, causal=False)
    assert jnp.allclose(out_nc, ref_nc, rtol=1e-4, atol=1e-4), "f32 non-causal mismatch"

    # --- bf16 production path: bf16 operands end to end, f32 accumulation ---
    mod_bf16 = AttentionPallas(dim, dim_heads=dim_heads, causal=True,
                               key=k_params, compute_dtype=jnp.bfloat16)
    out_bf = jax.block_until_ready(mod_bf16(x, rotary_pos_emb=rotary))
    assert out_bf.shape == (B, N, dim) and out_bf.dtype == x.dtype
    assert bool(jnp.all(jnp.isfinite(out_bf)))
    assert jnp.allclose(out_bf, ref, rtol=5e-2, atol=5e-2), "bf16 mismatch vs f32 ref"

    print("KERNEL_OK")
</pallas_src>

<mosaic_0001>
module attributes {stable_mosaic.version = 11 : i64} {
  func.func @_matmul_fullk_kernel(%arg0: i32, %arg1: i32, %arg2: memref<32x128xf32, #tpu.memory_space<vmem>>, %arg3: memref<128x384xf32, #tpu.memory_space<vmem>>, %arg4: memref<32x384xf32, #tpu.memory_space<vmem>>) attributes {dimension_semantics = [#tpu.dimension_semantics<parallel>, #tpu.dimension_semantics<parallel>], iteration_bounds = array<i64: 1, 1>, scalar_prefetch = 0 : i64, scratch_operands = 0 : i64, tpu.core_type = #tpu.core_type<tc>, window_params = [{transform_indices = @transform_0, window_bounds = array<i64: 32, 128>}, {transform_indices = @transform_1, window_bounds = array<i64: 128, 384>}, {transform_indices = @transform_2, window_bounds = array<i64: 32, 384>}]} {
    %c0 = arith.constant 0 : index
    %c0_0 = arith.constant 0 : index
    %0 = vector.load %arg2[%c0, %c0_0] : memref<32x128xf32, #tpu.memory_space<vmem>>, vector<32x128xf32>
    %c0_1 = arith.constant 0 : index
    %c0_2 = arith.constant 0 : index
    %1 = vector.load %arg3[%c0_1, %c0_2] : memref<128x384xf32, #tpu.memory_space<vmem>>, vector<128x384xf32>
    %cst = arith.constant dense<0.000000e+00> : vector<32x384xf32>
    %2 = tpu.matmul %0, %1, %cst {dimension_numbers = #tpu.dot_dimension_numbers<[1], [0], [0], [1], [0, 0, 1, 1], [], []>} : vector<32x128xf32>, vector<128x384xf32>, vector<32x384xf32> -> vector<32x384xf32>
    %c0_3 = arith.constant 0 : index
    %c0_4 = arith.constant 0 : index
    %3 = vector.load %arg4[%c0_3, %c0_4] : memref<32x384xf32, #tpu.memory_space<vmem>>, vector<32x384xf32>
    tpu.vector_store %arg4[%c0_3, %c0_4], %2 {strides = array<i32>} : memref<32x384xf32, #tpu.memory_space<vmem>>, vector<32x384xf32>,
    return
  }
  func.func @transform_0(%arg0: i32, %arg1: i32) -> (i32, i32) {
    %c0_i32 = arith.constant 0 : i32
    %c0_i32_0 = arith.constant 0 : i32
    return %arg0, %c0_i32 : i32, i32
  }
  func.func @transform_1(%arg0: i32, %arg1: i32) -> (i32, i32) {
    %c0_i32 = arith.constant 0 : i32
    %c0_i32_0 = arith.constant 0 : i32
    return %c0_i32, %arg1 : i32, i32
  }
  func.func @transform_2(%arg0: i32, %arg1: i32) -> (i32, i32) {
    %c0_i32 = arith.constant 0 : i32
    return %arg0, %arg1 : i32, i32
  }
}

</mosaic_0001>

<bundles_post_ra>
// kernel: tpu_custom_call.1
= control target key start
LH: loop header
LB: loop body
LE: loop exit
PB: predicated region body
PF: predicated region fallthrough
CT: control target
= control target key end

     0   :  { %7 = vsyncpa [#allocation3], 0  ;;  %s567_s0 = inlined_call_operand.hbm [shape: f32[32,128], index: 0, kind: input, shape index: {}]   ;;  %s568_s1 = inlined_call_operand.hbm [shape: f32[128,384], index: 1, kind: input, shape index: {}]   ;;  %s569_s2 = inlined_call_operand.hbm [shape: f32[32,384], index: 2, kind: output, shape index: {}]  }
   0x1   :  { %8 = vsyncpa [#allocation6], 0 }
   0x2   :  { %9 = vsyncpa [#allocation4], 0  ;;  %s498_s9 = smov [#allocation2]   ;;  %s426_s13 = scalar_lea.hbm %s567_s0, 512 }
   0x3   :  { %s15_s10 = sshll.u32 %s498_s9, 4  ;;  %p427_p0 = scmp.ne.s32.totalorder %s567_s0, %s426_s13  ;;  %s16_s10 = int_to_ptr.vmem [resolvable:$true] %s15_s10 }
   0x4   :  { %p430_p1 = scmp.lt.u32.totalorder %s426_s13, %s567_s0 }
   0x6   :  { %p432_p2 = pnand %p430_p1, %p427_p0 }
   0x8   :  { %435 = shalt.err (!%p432_p2)
}
   0x9   :  { %s436_s18 = scalar_lea.vmem %s16_s10, 512  ;;  %p441_p4 = scmp.lt.s32.totalorder %s16_s10, %s16_s10 }
   0xa   :  { %p437_p3 = scmp.ne.s32.totalorder %s16_s10, %s436_s18  ;;  %p442_p5 = scmp.lt.s32.totalorder %s436_s18, %s436_s18 }
   0xc   :  { %p443_p6 = por %p442_p5, %p441_p4 }
   0xe   :  { %p444_p7 = pnand %p443_p6, %p437_p3 }
  0x10   :  { %447 = shalt.err (!%p444_p7)
}
  0x11   :  { %s499_s19 = smov 128   ;;  %s500_s20 = smov 8  }
  0x12   :  { %21 = dma.hbm_to_vmem [thread:$0]  %s567_s0, 512, %s16_s10, [#allocation3], %s499_s19, %s499_s19, %s500_s20  }
  0x13   :  { %s501_s23 = smov [#allocation5]   ;;  %s448_s27 = scalar_lea.hbm %s568_s1, 6144 }
  0x14   :  { %s27_s24 = sshll.u32 %s501_s23, 4  ;;  %p449_p8 = scmp.ne.s32.totalorder %s568_s1, %s448_s27  ;;  %s28_s24 = int_to_ptr.vmem [resolvable:$true] %s27_s24 }
  0x15   :  { %p452_p9 = scmp.lt.u32.totalorder %s448_s27, %s568_s1 }
  0x17   :  { %p454_p10 = pnand %p452_p9, %p449_p8 }
  0x19   :  { %457 = shalt.err (!%p454_p10)
}
  0x1a   :  { %s458_s4 = scalar_lea.vmem %s28_s24, 6144  ;;  %p463_p12 = scmp.lt.s32.totalorder %s28_s24, %s28_s24 }
  0x1b   :  { %p459_p11 = scmp.ne.s32.totalorder %s28_s24, %s458_s4  ;;  %p464_p13 = scmp.lt.s32.totalorder %s458_s4, %s458_s4 }
  0x1d   :  { %p465_p0 = por %p464_p13, %p463_p12 }
  0x1f   :  { %p466_p1 = pnand %p465_p0, %p459_p11 }
  0x21   :  { %469 = shalt.err (!%p466_p1)
}
  0x22   :  { %s502_s0 = smov 384   ;;  %s503_s5 = smov 24  }
  0x23   :  { %33 = dma.hbm_to_vmem [thread:$0]  %s568_s1, 6144, %s28_s24, [#allocation6], %s502_s0, %s502_s0, %s503_s5  }
  0x24   :  { %492 = dma.done.wait [#allocation3], 512  }
  0x25   :  { %493 = vsyncadd [#allocation3], 4294966784 }
  0x26   :  { %494 = dma.done.wait [#allocation6], 6144  }
  0x27   :  { %495 = vsyncadd [#allocation6], 4294961152  ;;  %v504_v0 = vmov 0.0   ;;  %v45_v1 = vld [vmem:[#allocation5 + $0x8] sm:$0xff]  ;;  %v48_v2 = vld [vmem:[#allocation5 + $0x20] sm:$0xff]  ;;  %s505_s1 = smov [#allocation7]  }
  0x28   :  { %156 = vmatprep.mubr.f32.mxu0 %v504_v0  ;;  %v44_v3 = vld [vmem:[#allocation5] sm:$0xff]  ;;  %v354_v4 = vpack.c.bf16 %v48_v2, %v45_v1  ;;  %v47_v5 = vld [vmem:[#allocation5 + $0x18] sm:$0xff]  ;;  %v54_v7 = vld [vmem:[#allocation5 + $0x50] sm:$0xff]  ;;  %s283_s8 = sshll.u32 %s505_s1, 4  ;;  %s284_s8 = int_to_ptr.vmem [resolvable:$true] %s283_s8 }
  0x29   :  { %v51_v6 = vld [vmem:[#allocation5 + $0x38] sm:$0xff]  ;;  %v356_v8 = vpack.c.bf16 %v47_v5, %v44_v3  ;;  %v50_v10 = vld [vmem:[#allocation5 + $0x30] sm:$0xff]  ;;  %v53_v11 = vld [vmem:[#allocation5 + $0x48] sm:$0xff]  ;;  %s470_s9 = scalar_lea.vmem %s284_s8, 1536  ;;  %p475_p3 = scmp.lt.s32.totalorder %s284_s8, %s284_s8 }
  0x2a   :  { %v358_v9 = vpack.c.bf16 %v54_v7, %v51_v6  ;;  %v46_v12 = vld [vmem:[#allocation5 + $0x10] sm:$0xff]  ;;  %355 = vmatprep.subr.bf16.mxu0 %v354_v4  ;;  %v49_v13 = vld [vmem:[#allocation5 + $0x28] sm:$0xff]  ;;  %v60_v15 = vld [vmem:[#allocation5 + $0x80] sm:$0xff]  ;;  %v360_v16 = vpack.c.bf16 %v53_v11, %v50_v10  ;;  %p471_p2 = scmp.ne.s32.totalorder %s284_s8, %s470_s9  ;;  %p476_p4 = scmp.lt.s32.totalorder %s470_s9, %s470_s9 }
  0x2b   :  { %v57_v14 = vld [vmem:[#allocation5 + $0x68] sm:$0xff]  ;;  %357 = vmatpush1.bf16.msra.mxu0 %v356_v8  ;;  %v386_v17 = vpack.c.bf16 %v49_v13, %v46_v12  ;;  %v52_v18 = vld [vmem:[#allocation5 + $0x40] sm:$0xff]  ;;  %v59_v21 = vld [vmem:[#allocation5 + $0x78] sm:$0xff] }
  0x2c   :  { %359 = vmatprep.subr.bf16.mxu0 %v358_v9  ;;  %v362_v19 = vpack.c.bf16 %v60_v15, %v57_v14  ;;  %v56_v20 = vld [vmem:[#allocation5 + $0x60] sm:$0xff]  ;;  %v55_v22 = vld [vmem:[#allocation5 + $0x58] sm:$0xff]  ;;  %v66_v25 = vld [vmem:[#allocation5 + $0xb0] sm:$0xff]  ;;  %p477_p5 = por %p476_p4, %p475_p3 }
  0x2d   :  { %387 = vmatprep.subr.bf16.mxu1 %v386_v17  ;;  %v390_v23 = vpack.c.bf16 %v55_v22, %v52_v18  ;;  %v63_v24 = vld [vmem:[#allocation5 + $0x98] sm:$0xff]  ;;  %v58_v26 = vld [vmem:[#allocation5 + $0x70] sm:$0xff]  ;;  %v61_v27 = vld [vmem:[#allocation5 + $0x88] sm:$0xff]  ;;  %v364_v28 = vpack.c.bf16 %v59_v21, %v56_v20 }
  0x2e   :  { %389 = vmatpush3.bf16.msra.mxu1 %v386_v17  ;;  %v62_v29 = vld [vmem:[#allocation5 + $0x90] sm:$0xff]  ;;  %v394_v30 = vpack.c.bf16 %v61_v27, %v58_v26  ;;  %v366_v31 = vpack.c.bf16 %v66_v25, %v63_v24  ;;  %v65_v32 = vld [vmem:[#allocation5 + $0xa8] sm:$0xff]  ;;  %v64_v33 = vld [vmem:[#allocation5 + $0xa0] sm:$0xff]  ;;  %p478_p6 = pnand %p477_p5, %p471_p2 }
  0x2f   :  { %361 = vmatpush1.bf16.msra.mxu0 %v360_v16  ;;  %391 = vmatprep.subr.bf16.mxu1 %v390_v23  ;;  %v67_v34 = vld [vmem:[#allocation5 + $0xb8] sm:$0xff]  ;;  %v69_v35 = vld [vmem:[#allocation5 + $0xc8] sm:$0xff]  ;;  %v72_v36 = vld [vmem:[#allocation5 + $0xe0] sm:$0xff]  ;;  %v368_v37 = vpack.c.bf16 %v65_v32, %v62_v29 }
  0x30   :  { %363 = vmatprep.subr.bf16.mxu0 %v362_v19  ;;  %v68_v38 = vld [vmem:[#allocation5 + $0xc0] sm:$0xff]  ;;  %v398_v39 = vpack.c.bf16 %v67_v34, %v64_v33  ;;  %v370_v40 = vpack.c.bf16 %v72_v36, %v69_v35  ;;  %v71_v41 = vld [vmem:[#allocation5 + $0xd8] sm:$0xff]  ;;  %v70_v42 = vld [vmem:[#allocation5 + $0xd0] sm:$0xff] }
  0x31   :  { %v73_v43 = vld [vmem:[#allocation5 + $0xe8] sm:$0xff]  ;;  %v75_v44 = vld [vmem:[#allocation5 + $0xf8] sm:$0xff]  ;;  %v78_v45 = vld [vmem:[#allocation5 + $0x110] sm:$0xff]  ;;  %v372_v46 = vpack.c.bf16 %v71_v41, %v68_v38 }
  0x32   :  { %393 = vmatpush3.bf16.msra.mxu1 %v390_v23  ;;  %v74_v47 = vld [vmem:[#allocation5 + $0xf0] sm:$0xff]  ;;  %v402_v48 = vpack.c.bf16 %v73_v43, %v70_v42  ;;  %v40_v49 = vld [vmem:[#allocation2] sm:$0xff]  ;;  %v374_v50 = vpack.c.bf16 %v78_v45, %v75_v44  ;;  %v77_v51 = vld [vmem:[#allocation5 + $0x108] sm:$0xff] }
  0x33   :  { %365 = vmatpush1.bf16.msra.mxu0 %v364_v28  ;;  %395 = vmatprep.subr.bf16.mxu1 %v394_v30  ;;  %v76_v52 = vld [vmem:[#allocation5 + $0x100] sm:$0xff]  ;;  %v79_v53 = vld [vmem:[#allocation5 + $0x118] sm:$0xff]  ;;  %v81_v54 = vld [vmem:[#allocation5 + $0x128] sm:$0xff]  ;;  %v376_v56 = vpack.c.bf16 %v77_v51, %v74_v47 }
  0x34   :  { %367 = vmatprep.subr.bf16.mxu0 %v366_v31  ;;  %348 = vmatprep.mubr.f32.mxu1 %v40_v49  ;;  %v84_v55 = vld [vmem:[#allocation5 + $0x140] sm:$0xff]  ;;  %v406_v58 = vpack.c.bf16 %v79_v53, %v76_v52  ;;  %v83_v60 = vld [vmem:[#allocation5 + $0x138] sm:$0xff]  ;;  %v82_v61 = vld [vmem:[#allocation5 + $0x130] sm:$0xff] }
  0x35   :  { %v80_v57 = vld [vmem:[#allocation5 + $0x120] sm:$0xff]  ;;  %v378_v59 = vpack.c.bf16 %v84_v55, %v81_v54  ;;  %v85_v62 = vld [vmem:[#allocation5 + $0x148] sm:$0xff]  ;;  %v87_v63 = vld [vmem:[#allocation5 + $0x158] sm:$0xff] }
  0x36   :  { %397 = vmatpush3.bf16.msra.mxu1 %v394_v30  ;;  %v90_v1 = vld [vmem:[#allocation5 + $0x170] sm:$0xff]  ;;  %v380_v2 = vpack.c.bf16 %v83_v60, %v80_v57  ;;  %v410_v4 = vpack.c.bf16 %v85_v62, %v82_v61  ;;  %v89_v6 = vld [vmem:[#allocation5 + $0x168] sm:$0xff]  ;;  %v88_v7 = vld [vmem:[#allocation5 + $0x160] sm:$0xff] }
  0x37   :  { %369 = vmatpush1.bf16.msra.mxu0 %v368_v37  ;;  %399 = vmatprep.subr.bf16.mxu1 %v398_v39  ;;  %v86_v3 = vld [vmem:[#allocation5 + $0x150] sm:$0xff]  ;;  %v382_v5 = vpack.c.bf16 %v90_v1, %v87_v63  ;;  %v91_v8 = vld [vmem:[#allocation5 + $0x178] sm:$0xff]  ;;  %v41_v11 = vld [vmem:[#allocation2 + $0x8] sm:$0xff] }
  0x38   :  { %371 = vmatprep.subr.bf16.mxu0 %v370_v40  ;;  %v384_v9 = vpack.c.bf16 %v89_v6, %v86_v3  ;;  %v414_v10 = vpack.c.bf16 %v91_v8, %v88_v7  ;;  %v42_v12 = vld [vmem:[#allocation2 + $0x10] sm:$0xff]  ;;  %v43_v13 = vld [vmem:[#allocation2 + $0x18] sm:$0xff] }
  0x3a   :  { %401 = vmatpush3.bf16.msra.mxu1 %v398_v39 }
  0x3b   :  { %373 = vmatpush1.bf16.msra.mxu0 %v372_v46  ;;  %403 = vmatprep.subr.bf16.mxu1 %v402_v48 }
  0x3c   :  { %375 = vmatprep.subr.bf16.mxu0 %v374_v50 }
  0x3e   :  { %405 = vmatpush3.bf16.msra.mxu1 %v402_v48 }
  0x3f   :  { %377 = vmatpush1.bf16.msra.mxu0 %v376_v56  ;;  %407 = vmatprep.subr.bf16.mxu1 %v406_v58 }
  0x40   :  { %379 = vmatprep.subr.bf16.mxu0 %v378_v59 }
  0x42   :  { %409 = vmatpush3.bf16.msra.mxu1 %v406_v58 }
  0x43   :  { %381 = vmatpush1.bf16.msra.mxu0 %v380_v2  ;;  %411 = vmatprep.subr.bf16.mxu1 %v410_v4 }
  0x44   :  { %383 = vmatprep.subr.bf16.mxu0 %v382_v5 }
  0x46   :  { %413 = vmatpush3.bf16.msra.mxu1 %v410_v4 }
  0x47   :  { %385 = vmatpush1.bf16.msra.mxu0 %v384_v9  ;;  %415 = vmatprep.subr.bf16.mxu1 %v414_v10 }
  0x4a   :  { %157 = vmatmul.mubr.f32.vlgmr.msra.gmra.mrb[0].mxu0 %v40_v49  ;;  %417 = vmatpush3.bf16.msra.mxu1 %v414_v10 }
  0x4b   :  { %162 = vmatprep.mubr.f32.mxu0 %v504_v0 }
  0x4d   :  { %349 = vmatmul.mubr.f32.vlgmr.msra.gmra.mrb[0].mxu1 %v41_v11 }
  0x4e   :  { %163 = vmatmul.mubr.f32.gmra.mrb[2].mxu0 %v41_v11  ;;  %351 = vmatprep.mubr.f32.mxu1 %v42_v12 }
  0x4f   :  { %168 = vmatprep.mubr.f32.mxu0 %v504_v0 }
  0x51   :  { %352 = vmatmul.mubr.f32.gmra.mrb[2].mxu1 %v43_v13 }
  0x52   :  { %169 = vmatmul.mubr.f32.gmra.mrb[4].mxu0 %v42_v12 }
  0x53   :  { %174 = vmatprep.mubr.f32.mxu0 %v504_v0 }
  0x56   :  { %175 = vmatmul.mubr.f32.gmra.mrb[6].mxu0 %v43_v13 }
 0x11d   :  { %v158_v14 = vpop.f32.mrb[0].mxu0 }
 0x11e   :  { %266 = vst [vmem:[#allocation7] sm:$0xff] %v158_v14  ;;  %v160_v15 = vpop.f32.mrb[1].mxu0 }
 0x11f   :  { %267 = vst [vmem:[#allocation7 + $0x8] sm:$0xff] %v160_v15 }
 0x120   :  { %v350_v16 = vpop.f32.mrb[0].mxu1 }
 0x121   :  { %v164_v17 = vpop.f32.mrb[2].mxu0  ;;  %271 = vst [vmem:[#allocation7 + $0x28] sm:$0xff] %v350_v16  ;;  %v247_v18 = vpop.f32.mrb[1].mxu1 }
 0x122   :  { %269 = vst [vmem:[#allocation7 + $0x18] sm:$0xff] %v164_v17  ;;  %v166_v19 = vpop.f32.mrb[3].mxu0  ;;  %268 = vst [vmem:[#allocation7 + $0x10] sm:$0xff] %v247_v18 }
 0x123   :  { %270 = vst [vmem:[#allocation7 + $0x20] sm:$0xff] %v166_v19 }
 0x124   :  { %v353_v20 = vpop.f32.mrb[2].mxu1 }
 0x125   :  { %v170_v21 = vpop.f32.mrb[4].mxu0  ;;  %277 = vst [vmem:[#allocation7 + $0x58] sm:$0xff] %v353_v20  ;;  %v257_v22 = vpop.f32.mrb[3].mxu1 }
 0x126   :  { %272 = vst [vmem:[#allocation7 + $0x30] sm:$0xff] %v170_v21  ;;  %v172_v23 = vpop.f32.mrb[5].mxu0  ;;  %274 = vst [vmem:[#allocation7 + $0x40] sm:$0xff] %v257_v22 }
 0x127   :  { %273 = vst [vmem:[#allocation7 + $0x38] sm:$0xff] %v172_v23 }
 0x129   :  { %v176_v0 = vpop.f32.mrb[6].mxu0 }
 0x12a   :  { %275 = vst [vmem:[#allocation7 + $0x48] sm:$0xff] %v176_v0  ;;  %v178_v24 = vpop.f32.mrb[7].mxu0 }
 0x12b   :  { %276 = vst [vmem:[#allocation7 + $0x50] sm:$0xff] %v178_v24 }
 0x12c   :  { %481 = shalt.err (!%p478_p6)
}
 0x12d   :  { %s482_s12 = scalar_lea.hbm %s569_s2, 1536 }
 0x12e   :  { %p483_p7 = scmp.ne.s32.totalorder %s569_s2, %s482_s12  ;;  %p486_p8 = scmp.lt.u32.totalorder %s482_s12, %s569_s2 }
 0x130   :  { %p488_p9 = pnand %p486_p8, %p483_p7 }
 0x132   :  { %491 = shalt.err (!%p488_p9)
}
 0x133   :  { %289 = dma.vmem_to_hbm [thread:$0]  %s284_s8, 1536, %s569_s2, [#allocation4], %s502_s0, %s502_s0, %s503_s5  }
 0x134   :  { %496 = dma.done.wait [#allocation4], 1536  }
 0x135   :  { %497 = vsyncadd [#allocation4], 4294965760 }
 0x136   :  { %293 = vsyncpa [#allocation3], 1 }
 0x137   :  { %294 = vsyncpa [#allocation6], 1 }
 0x138   :  { %295 = vsyncpa [#allocation4], 1 }

</bundles_post_ra>
